<compile_context>
chip_gen: v7x
topology: tpu7x:2x2x1
jax: 0.10.0
libtpu: 0.0.40
codegen_flags: <defaults>
</compile_context>

<pallas_src>
import functools

import jax
import jax.numpy as jnp
import numpy as np
from jax.experimental import pallas as pl
from jax.experimental.pallas import tpu as pltpu


def _round_up(v, m):
    return ((v + m - 1) // m) * m


def _pick_tile(n_pad, requested, min_tiles=1):
    """Largest multiple of 128 that divides n_pad, is <= requested, and (when
    possible) leaves at least `min_tiles` tiles along the axis."""
    m = n_pad // 128
    cap = m if min_tiles <= 1 else max(1, m // min_tiles)
    cap = max(1, min(requested // 128, cap))
    best = 1
    for t in range(1, cap + 1):
        if m % t == 0:
            best = t
    return best * 128


def _vmem_limit_bytes():
    """Generation-aware VMEM limit: ~78% of physical per-core VMEM
    (~100 MiB on v5e/v6e with 128 MiB, ~50 MiB on v7x with 64 MiB)."""
    cap = 64 * 1024 * 1024  # conservative fallback = v7x physical size
    try:
        info = pltpu.get_tpu_info()
        c = getattr(info, "vmem_capacity_bytes", None)
        if c:
            cap = int(c)
    except Exception:
        pass
    return min(int(cap * 0.78), cap - (8 << 20))


def prepare_graph_conv(adj, *, tile_n=512, tile_k=1024,
                       compute_dtype=jnp.bfloat16):
    """One-time, host-side preprocessing of the (fixed) adjacency matrix.

    Pads adj to a multiple of 128, casts it once to the MXU compute dtype,
    and builds per-row-tile lists of non-zero column blocks so the kernel can
    skip all-zero adj blocks (both the DMA and the MXU work).
    For genuinely block-sparse graphs a smaller tile_k (256-512) improves the
    skip yield; the default 1024 favours per-step overhead amortisation.
    """
    adj_np = np.asarray(adj, dtype=np.float32)
    N = adj_np.shape[0]
    assert adj_np.shape == (N, N)

    n_pad = _round_up(max(N, 128), 128)
    tn = _pick_tile(n_pad, tile_n, min_tiles=2 if n_pad >= 256 else 1)
    tk = _pick_tile(n_pad, tile_k, min_tiles=1)

    adj_pad = np.zeros((n_pad, n_pad), np.float32)
    adj_pad[:N, :N] = adj_np

    n_row_tiles = n_pad // tn
    n_k_blocks = n_pad // tk
    nz = (np.abs(adj_pad).reshape(n_row_tiles, tn, n_k_blocks, tk)
          .sum(axis=(1, 3)) > 0.0)                         # (row_tiles, k_blocks)
    counts = nz.sum(axis=1).astype(np.int32)
    max_blocks = max(1, int(counts.max()))
    bids = np.zeros((n_row_tiles, max_blocks), np.int32)
    for r in range(n_row_tiles):
        ids = np.nonzero(nz[r])[0].astype(np.int32)
        if ids.size == 0:
            ids = np.zeros((1,), np.int32)   # placeholder; compute is skipped anyway
        bids[r, : ids.size] = ids
        bids[r, ids.size:] = ids[-1]         # repeat last id -> padded steps reuse the
                                             # same block index (DMA elided)

    return dict(
        adj=jnp.asarray(adj_pad, dtype=compute_dtype),     # persistent padded copy
        counts=jnp.asarray(counts),
        bids=jnp.asarray(bids.reshape(-1)),                # flat 1-D -> cheap SMEM layout
        N=int(N), n_pad=int(n_pad), tile_n=int(tn), tile_k=int(tk),
        max_blocks=int(max_blocks), total_blocks=int(counts.sum()),
    )


def _adj_xw_kernel(counts_ref, bids_ref, adj_ref, xw_ref, out_ref, *scratch,
                   tile_k, max_blocks, xw_resident, apply_relu):
    """out = relu(adj @ xw); block-sparse K reduction, resident accumulator.

    Grid: (row_tiles, max_blocks); axis 1 is the reduction -> last, "arbitrary".
    For f32 outputs the accumulator is the output block itself; otherwise an
    f32 VMEM scratch is used and cast on the final step.
    """
    i = pl.program_id(0)
    j = pl.program_id(1)
    acc_ref = scratch[0] if scratch else out_ref

    @pl.when(j == 0)
    def _():
        acc_ref[...] = jnp.zeros_like(acc_ref)

    # Only the first counts[i] steps correspond to non-zero adj blocks.
    @pl.when(j < counts_ref[i])
    def _():
        if xw_resident:
            bid = bids_ref[i * max_blocks + j]
            k0 = pl.multiple_of(bid * tile_k, 128)
            xw_blk = xw_ref[pl.ds(k0, tile_k), :]
        else:
            xw_blk = xw_ref[...]
        acc_ref[...] += jnp.dot(adj_ref[...], xw_blk,
                                preferred_element_type=jnp.float32)

    @pl.when(j == pl.num_programs(1) - 1)
    def _():
        res = acc_ref[...]
        if apply_relu:
            res = jnp.maximum(res, 0.0)
        out_ref[...] = res.astype(out_ref.dtype)


@functools.partial(
    jax.jit,
    static_argnames=("N", "n_pad", "tile_n", "tile_k", "max_blocks",
                     "total_blocks", "apply_relu", "out_dtype"))
def _graph_conv_forward(x, weight, adj_p, counts, bids, *, N, n_pad, tile_n,
                        tile_k, max_blocks, total_blocks, apply_relu,
                        out_dtype):
    D, H = weight.shape
    compute_dtype = adj_p.dtype
    c_bytes = np.dtype(compute_dtype).itemsize
    o_bytes = np.dtype(out_dtype).itemsize

    # 1) Hoist x @ W out of the kernel (small matmul, XLA handles it), then
    #    pad to a lane-dense (n_pad, h_pad) operand in the compute dtype.
    #    h_pad: multiple of 128 is enough here (HBM-bound); bump to 256 on
    #    v6e/v7x only if H > 128 and the layer ever becomes MXU-bound.
    h_pad = _round_up(max(H, 128), 128)
    xw = jnp.dot(x.astype(jnp.float32), weight.astype(jnp.float32),
                 preferred_element_type=jnp.float32)
    xw_p = jnp.zeros((n_pad, h_pad), compute_dtype)
    xw_p = xw_p.at[:N, :H].set(xw.astype(compute_dtype))

    # 2) Generation-aware VMEM budget; keep xw fully resident if it fits.
    vmem_limit = _vmem_limit_bytes()
    use_scratch = np.dtype(out_dtype) != np.dtype(np.float32)
    resident_cost = (2 * n_pad * h_pad * c_bytes           # xw (worst case 2 bufs)
                     + 2 * tile_n * tile_k * c_bytes       # adj, double-buffered
                     + 2 * tile_n * h_pad * o_bytes        # out, double-buffered
                     + (tile_n * h_pad * 4 if use_scratch else 0))
    xw_resident = resident_cost <= int(0.6 * vmem_limit)

    grid = (n_pad // tile_n, max_blocks)

    adj_spec = pl.BlockSpec(
        (tile_n, tile_k),
        lambda i, j, counts, bids: (i, bids[i * max_blocks + j]))
    if xw_resident:
        # Constant block index -> single DMA, kept VMEM-resident for the grid.
        xw_spec = pl.BlockSpec((n_pad, h_pad), lambda i, j, counts, bids: (0, 0))
    else:
        xw_spec = pl.BlockSpec(
            (tile_k, h_pad),
            lambda i, j, counts, bids: (bids[i * max_blocks + j], 0))
    out_spec = pl.BlockSpec((tile_n, h_pad), lambda i, j, counts, bids: (i, 0))

    scratch_shapes = ([pltpu.VMEM((tile_n, h_pad), jnp.float32)]
                      if use_scratch else [])

    cost = pl.CostEstimate(
        flops=2 * total_blocks * tile_n * tile_k * h_pad,
        transcendentals=0,
        bytes_accessed=(
            total_blocks * tile_n * tile_k * c_bytes                  # adj blocks
            + (n_pad * h_pad * c_bytes if xw_resident
               else total_blocks * tile_k * h_pad * c_bytes)          # xw
            + n_pad * h_pad * o_bytes),                               # output
    )

    out_p = pl.pallas_call(
        functools.partial(_adj_xw_kernel, tile_k=tile_k, max_blocks=max_blocks,
                          xw_resident=xw_resident, apply_relu=apply_relu),
        out_shape=jax.ShapeDtypeStruct((n_pad, h_pad), out_dtype),
        grid_spec=pltpu.PrefetchScalarGridSpec(
            num_scalar_prefetch=2,
            grid=grid,
            in_specs=[adj_spec, xw_spec],
            out_specs=out_spec,
            scratch_shapes=scratch_shapes,
        ),
        compiler_params=pltpu.CompilerParams(
            # Row tiles are independent -> parallel (>= 2 tiles when possible,
            # so both v7x TensorCores get work); the block-list reduction axis
            # carries the accumulator -> arbitrary, last.
            dimension_semantics=("parallel", "arbitrary"),
            vmem_limit_bytes=vmem_limit,
        ),
        cost_estimate=cost,
    )(counts, bids, adj_p, xw_p)

    return out_p[:N, :H]


def graph_conv_sparse(x, weight, prep, *, apply_relu=True,
                      out_dtype=jnp.float32):
    """Pallas GraphConvSparse.forward: relu(adj @ (x @ W)).

    `prep` is prepare_graph_conv(adj) (built once per graph).  Use
    out_dtype=jnp.bfloat16 to halve output HBM traffic if the consumer (the
    next GCN layer) casts to bf16 anyway; the default f32 matches the PyTorch
    module modulo the documented compute-dtype rounding of adj / xw.
    """
    return _graph_conv_forward(
        x, weight, prep["adj"], prep["counts"], prep["bids"],
        N=prep["N"], n_pad=prep["n_pad"], tile_n=prep["tile_n"],
        tile_k=prep["tile_k"], max_blocks=prep["max_blocks"],
        total_blocks=prep["total_blocks"], apply_relu=apply_relu,
        out_dtype=out_dtype)


def glorot_init(key, input_dim, output_dim):
    """Deterministic re-implementation of the module's glorot_init."""
    init_range = np.sqrt(6.0 / (input_dim + output_dim))
    u = jax.random.uniform(key, (input_dim, output_dim), dtype=jnp.float32)
    return u * (2.0 * init_range) - init_range


if __name__ == "__main__":
    key = jax.random.PRNGKey(0)
    k_x, k_w, k_a = jax.random.split(key, 3)

    N = 128          # number of graph nodes
    input_dim = 64   # input feature dim
    output_dim = 32  # hidden dim

    x = jax.random.normal(k_x, (N, input_dim), dtype=jnp.float32)
    weight = glorot_init(k_w, input_dim, output_dim)

    # Synthetic symmetric-normalised adjacency (the module's torch.mm is a
    # dense matmul anyway).
    a = (jax.random.uniform(k_a, (N, N)) < 0.05).astype(jnp.float32)
    a = jnp.maximum(a, a.T) + jnp.eye(N, dtype=jnp.float32)
    deg = jnp.sum(a, axis=1)
    d_inv_sqrt = 1.0 / jnp.sqrt(deg)
    adj = a * d_inv_sqrt[:, None] * d_inv_sqrt[None, :]

    # One-time graph preprocessing: persistent bf16 padded adj + block lists.
    prep = prepare_graph_conv(adj)

    out = graph_conv_sparse(x, weight, prep)
    out = jax.block_until_ready(out)

    # Reference with the same bf16 operand rounding, f32 accumulation.
    xw_ref = jnp.dot(x, weight).astype(jnp.bfloat16).astype(jnp.float32)
    adj_ref = adj.astype(jnp.bfloat16).astype(jnp.float32)
    ref_bf16 = jnp.maximum(adj_ref @ xw_ref, 0.0)
    np.testing.assert_allclose(np.asarray(out), np.asarray(ref_bf16),
                               rtol=1e-4, atol=1e-4)

    # Looser sanity check against the full-f32 math of the original module.
    ref_f32 = jnp.maximum(adj @ (x @ weight), 0.0)
    np.testing.assert_allclose(np.asarray(out), np.asarray(ref_f32),
                               rtol=2e-2, atol=2e-2)

    print("KERNEL_OK")
</pallas_src>

<mosaic_0001>
module attributes {stable_mosaic.version = 11 : i64} {
  func.func @_adj_xw_kernel(%arg0: i32, %arg1: i32, %arg2: memref<1xi32, #tpu.memory_space<smem>>, %arg3: memref<1xi32, #tpu.memory_space<smem>>, %arg4: memref<128x128xbf16, #tpu.memory_space<vmem>>, %arg5: memref<128x128xbf16, #tpu.memory_space<vmem>>, %arg6: memref<128x128xf32, #tpu.memory_space<vmem>>) attributes {dimension_semantics = [#tpu.dimension_semantics<parallel>, #tpu.dimension_semantics<arbitrary>], iteration_bounds = array<i64: 1, 1>, scalar_prefetch = 2 : i64, scratch_operands = 0 : i64, tpu.core_type = #tpu.core_type<tc>, window_params = [{transform_indices = @transform_0, window_bounds = array<i64: 128, 128>}, {pipeline_mode = #tpu.pipeline_mode<synchronous>, transform_indices = @transform_1, window_bounds = array<i64: 128, 128>}, {transform_indices = @transform_2, window_bounds = array<i64: 128, 128>}]} {
    %c0_i32 = arith.constant 0 : i32
    %0 = arith.cmpi eq, %arg1, %c0_i32 : i32
    %1 = arith.extui %0 : i1 to i32
    %c0_i32_0 = arith.constant 0 : i32
    %2 = arith.cmpi ne, %1, %c0_i32_0 : i32
    scf.if %2 {
      %cst = arith.constant 0.000000e+00 : f32
      %11 = vector.broadcast %cst : f32 to vector<128x128xf32>
      %c0 = arith.constant 0 : index
      %c0_4 = arith.constant 0 : index
      %12 = vector.load %arg6[%c0, %c0_4] : memref<128x128xf32, #tpu.memory_space<vmem>>, vector<128x128xf32>
      tpu.vector_store %arg6[%c0, %c0_4], %11 {strides = array<i32>} : memref<128x128xf32, #tpu.memory_space<vmem>>, vector<128x128xf32>,
    } else {
    }
    %3 = arith.index_cast %arg0 : i32 to index
    %4 = memref.load %arg2[%3] : memref<1xi32, #tpu.memory_space<smem>>
    %5 = arith.cmpi slt, %arg1, %4 : i32
    %6 = arith.extui %5 : i1 to i32
    %c0_i32_1 = arith.constant 0 : i32
    %7 = arith.cmpi ne, %6, %c0_i32_1 : i32
    scf.if %7 {
      %c1_i32 = arith.constant 1 : i32
      %11 = arith.muli %arg0, %c1_i32 : i32
      %12 = arith.addi %11, %arg1 : i32
      %13 = arith.index_cast %12 : i32 to index
      %14 = memref.load %arg3[%13] : memref<1xi32, #tpu.memory_space<smem>>
      %c128_i32 = arith.constant 128 : i32
      %15 = arith.muli %14, %c128_i32 : i32
      %16 = tpu.assume_multiple %15, 128 : i32
      %17 = arith.index_cast %16 : i32 to index
      %c0 = arith.constant 0 : index
      %18 = vector.load %arg5[%17, %c0] : memref<128x128xbf16, #tpu.memory_space<vmem>>, vector<128x128xbf16>
      %c0_4 = arith.constant 0 : index
      %c0_5 = arith.constant 0 : index
      %19 = vector.load %arg6[%c0_4, %c0_5] : memref<128x128xf32, #tpu.memory_space<vmem>>, vector<128x128xf32>
      %c0_6 = arith.constant 0 : index
      %c0_7 = arith.constant 0 : index
      %20 = vector.load %arg4[%c0_6, %c0_7] : memref<128x128xbf16, #tpu.memory_space<vmem>>, vector<128x128xbf16>
      %cst = arith.constant dense<0.000000e+00> : vector<128x128xf32>
      %21 = tpu.matmul %20, %18, %cst {dimension_numbers = #tpu.dot_dimension_numbers<[1], [0], [0], [1], [0, 0, 1, 1], [], []>} : vector<128x128xbf16>, vector<128x128xbf16>, vector<128x128xf32> -> vector<128x128xf32>
      %22 = arith.addf %19, %21 : vector<128x128xf32>
      %c0_8 = arith.constant 0 : index
      %c0_9 = arith.constant 0 : index
      %23 = vector.load %arg6[%c0_8, %c0_9] : memref<128x128xf32, #tpu.memory_space<vmem>>, vector<128x128xf32>
      tpu.vector_store %arg6[%c0_8, %c0_9], %22 {strides = array<i32>} : memref<128x128xf32, #tpu.memory_space<vmem>>, vector<128x128xf32>,
    } else {
    }
    %c0_i32_2 = arith.constant 0 : i32
    %8 = arith.cmpi eq, %arg1, %c0_i32_2 : i32
    %9 = arith.extui %8 : i1 to i32
    %c0_i32_3 = arith.constant 0 : i32
    %10 = arith.cmpi ne, %9, %c0_i32_3 : i32
    scf.if %10 {
      %c0 = arith.constant 0 : index
      %c0_4 = arith.constant 0 : index
      %11 = vector.load %arg6[%c0, %c0_4] : memref<128x128xf32, #tpu.memory_space<vmem>>, vector<128x128xf32>
      %cst = arith.constant 0.000000e+00 : f32
      %12 = vector.broadcast %cst : f32 to vector<128x128xf32>
      %13 = arith.maximumf %11, %12 : vector<128x128xf32>
      %c0_5 = arith.constant 0 : index
      %c0_6 = arith.constant 0 : index
      %14 = vector.load %arg6[%c0_5, %c0_6] : memref<128x128xf32, #tpu.memory_space<vmem>>, vector<128x128xf32>
      tpu.vector_store %arg6[%c0_5, %c0_6], %13 {strides = array<i32>} : memref<128x128xf32, #tpu.memory_space<vmem>>, vector<128x128xf32>,
    } else {
    }
    return
  }
  func.func @transform_0(%arg0: i32, %arg1: i32, %arg2: memref<1xi32, #tpu.memory_space<smem>>, %arg3: memref<1xi32, #tpu.memory_space<smem>>) -> (i32, i32) {
    %c1_i32 = arith.constant 1 : i32
    %0 = arith.muli %arg0, %c1_i32 : i32
    %1 = arith.addi %0, %arg1 : i32
    %2 = arith.index_cast %1 : i32 to index
    %3 = memref.load %arg3[%2] : memref<1xi32, #tpu.memory_space<smem>>
    %c0_i32 = arith.constant 0 : i32
    return %arg0, %3 : i32, i32
  }
  func.func @transform_1(%arg0: i32, %arg1: i32, %arg2: memref<1xi32, #tpu.memory_space<smem>>, %arg3: memref<1xi32, #tpu.memory_space<smem>>) -> (i32, i32) {
    %c0_i32 = arith.constant 0 : i32
    %c0_i32_0 = arith.constant 0 : i32
    %c0_i32_1 = arith.constant 0 : i32
    return %c0_i32, %c0_i32_0 : i32, i32
  }
  func.func @transform_2(%arg0: i32, %arg1: i32, %arg2: memref<1xi32, #tpu.memory_space<smem>>, %arg3: memref<1xi32, #tpu.memory_space<smem>>) -> (i32, i32) {
    %c0_i32 = arith.constant 0 : i32
    %c0_i32_0 = arith.constant 0 : i32
    return %arg0, %c0_i32 : i32, i32
  }
}

</mosaic_0001>

<bundles_post_ra>
// kernel: _graph_conv_forward.1
= control target key start
LH: loop header
LB: loop body
LE: loop exit
PB: predicated region body
PF: predicated region fallthrough
CT: control target
= control target key end

     0   :  { %v508_v0 = vmov 0.0   ;;  %s816_s0 = inlined_call_operand.<no memory space> [shape: s32[1], index: 0, kind: input, shape index: {}]   ;;  %s817_s1 = inlined_call_operand.<no memory space> [shape: s32[1], index: 1, kind: input, shape index: {}]   ;;  %s818_s3 = inlined_call_operand.vmem [shape: bf16[128,128], index: 3, kind: input, shape index: {}]   ;;  %s819_s4 = inlined_call_operand.vmem [shape: f32[128,128], index: 4, kind: output, shape index: {}]   ;;  %s820_s2 = inlined_call_operand.vmem [shape: bf16[128,128], index: 2, kind: input, shape index: {}]  }
   0x1   :  { %10 = sst [smem:[#allocation4]] %s817_s1  ;;  %p31_p0 = scmp.lt.s32.totalorder %s817_s1, 0  ;;  %42 = vst [vmem:[%s819_s4] sm:$0xff] %v508_v0  ;;  %43 = vst [vmem:[%s819_s4 + $0x8] sm:$0xff] %v508_v0 }
   0x2   :  { %44 = vst [vmem:[%s819_s4 + $0x10] sm:$0xff] %v508_v0  ;;  %45 = vst [vmem:[%s819_s4 + $0x18] sm:$0xff] %v508_v0  ;;  %p408_p1 = scmp.le.s32.totalorder %s816_s0, 0 }
   0x3   :  { %46 = vst [vmem:[%s819_s4 + $0x20] sm:$0xff] %v508_v0  ;;  %47 = vst [vmem:[%s819_s4 + $0x28] sm:$0xff] %v508_v0  ;;  %s822_s1 = smov (!%p31_p0, %s817_s1), 0  ;;  %s64_s9 = sld [smem:[#allocation4]] (!%p408_p1) }
   0x4   :  { %48 = vst [vmem:[%s819_s4 + $0x30] sm:$0xff] %v508_v0  ;;  %49 = vst [vmem:[%s819_s4 + $0x38] sm:$0xff] %v508_v0  ;;  %s406_s29 = sshll.u32 %s822_s1, 2  ;;  %62 = sbr.rel (%p408_p1) target bundleno = 272 (0x110), region = 17 }
   0x5   :  { %50 = vst [vmem:[%s819_s4 + $0x40] sm:$0xff] %v508_v0  ;;  %51 = vst [vmem:[%s819_s4 + $0x48] sm:$0xff] %v508_v0  ;;  %s598_s6 = scalar_lea.vmem %s820_s2, %s406_s29 }
   0x6   :  { %52 = vst [vmem:[%s819_s4 + $0x50] sm:$0xff] %v508_v0  ;;  %53 = vst [vmem:[%s819_s4 + $0x58] sm:$0xff] %v508_v0  ;;  %v500_v1 = vld [vmem:[%s598_s6] sm:$0xff] (!%p408_p1)   ;;  %v502_v11 = vld [vmem:[%s598_s6 + $0x8] sm:$0xff] (!%p408_p1)  }
   0x7   :  { %54 = vst [vmem:[%s819_s4 + $0x60] sm:$0xff] %v508_v0  ;;  %55 = vst [vmem:[%s819_s4 + $0x68] sm:$0xff] %v508_v0  ;;  %v501_v2 = vld [vmem:[%s598_s6 + $0x20] sm:$0xff] (!%p408_p1)   ;;  %459 = vmatprep.mubr.bf16.mxu0 (!%p408_p1), %v500_v1  ;;  %v503_v12 = vld [vmem:[%s598_s6 + $0x28] sm:$0xff] (!%p408_p1)  }
   0x8   :  { %56 = vst [vmem:[%s819_s4 + $0x70] sm:$0xff] %v508_v0  ;;  %57 = vst [vmem:[%s819_s4 + $0x78] sm:$0xff] %v508_v0  ;;  %467 = vmatprep.mubr.bf16.mxu1 (!%p408_p1), %v501_v2  ;;  %v504_v13 = vld [vmem:[%s598_s6 + $0x10] sm:$0xff] (!%p408_p1)   ;;  %v506_v15 = vld [vmem:[%s598_s6 + $0x18] sm:$0xff] (!%p408_p1)  }
   0x9   :  { %s409_s10 = sshll.u32 (!%p408_p1), %s64_s9, 7  ;;  %v505_v14 = vld [vmem:[%s598_s6 + $0x30] sm:$0xff] (!%p408_p1)   ;;  %v507_v16 = vld [vmem:[%s598_s6 + $0x38] sm:$0xff] (!%p408_p1)   ;;  %v86_v19 = vld [vmem:[%s819_s4] sm:$0xff] (!%p408_p1) }
   0xa   :  { %s66_s11 = sshra.s32 (!%p408_p1), %s409_s10, 3  ;;  %v88_v17 = vld [vmem:[%s819_s4 + $0x10] sm:$0xff] (!%p408_p1)  ;;  %v89_v23 = vld [vmem:[%s819_s4 + $0x18] sm:$0xff] (!%p408_p1)  ;;  %v87_v29 = vld [vmem:[%s819_s4 + $0x8] sm:$0xff] (!%p408_p1) }
   0xb   :  { %s410_s1 = sshll.u32 %s66_s11, 2  ;;  %v92_v41 = vld [vmem:[%s819_s4 + $0x30] sm:$0xff]  ;;  %v90_v43 = vld [vmem:[%s819_s4 + $0x20] sm:$0xff]  ;;  %v93_v47 = vld [vmem:[%s819_s4 + $0x38] sm:$0xff] }
   0xc   :  { %s608_s2 = scalar_lea.vmem %s818_s3, %s410_s1  ;;  %v94_v20 = vld [vmem:[%s819_s4 + $0x40] sm:$0xff]  ;;  %v95_v30 = vld [vmem:[%s819_s4 + $0x48] sm:$0xff] }
   0xd   :  { %v492_v3 = vld [vmem:[%s608_s2] sm:$0xff]   ;;  %v493_v4 = vld [vmem:[%s608_s2 + $0x8] sm:$0xff]   ;;  %v494_v5 = vld [vmem:[%s608_s2 + $0x10] sm:$0xff]  }
   0xe   :  { %443 = vmatprep.subr.bf16.mxu0 %v492_v3  ;;  %475 = vmatprep.subr.bf16.mxu1 %v492_v3  ;;  %v495_v6 = vld [vmem:[%s608_s2 + $0x18] sm:$0xff]   ;;  %v496_v7 = vld [vmem:[%s608_s2 + $0x20] sm:$0xff]   ;;  %v497_v8 = vld [vmem:[%s608_s2 + $0x28] sm:$0xff]  }
   0xf   :  { %444 = vmatpush3.bf16.msra.mxu0 %v492_v3  ;;  %483 = vmatpush3.bf16.msra.mxu1 %v492_v3  ;;  %v498_v9 = vld [vmem:[%s608_s2 + $0x30] sm:$0xff]   ;;  %v499_v10 = vld [vmem:[%s608_s2 + $0x38] sm:$0xff]   ;;  %v98_v44 = vld [vmem:[%s819_s4 + $0x60] sm:$0xff] }
  0x10   :  { %445 = vmatprep.subr.bf16.mxu0 %v493_v4  ;;  %476 = vmatprep.subr.bf16.mxu1 %v493_v4  ;;  %v96_v18 = vld [vmem:[%s819_s4 + $0x50] sm:$0xff]  ;;  %v97_v24 = vld [vmem:[%s819_s4 + $0x58] sm:$0xff]  ;;  %v91_v53 = vld [vmem:[%s819_s4 + $0x28] sm:$0xff] }
  0x11   :  { %v100_v42 = vld [vmem:[%s819_s4 + $0x70] sm:$0xff]  ;;  %v101_v48 = vld [vmem:[%s819_s4 + $0x78] sm:$0xff]  ;;  %v99_v54 = vld [vmem:[%s819_s4 + $0x68] sm:$0xff] }
  0x13   :  { %446 = vmatpush3.bf16.msra.mxu0 %v493_v4  ;;  %484 = vmatpush3.bf16.msra.mxu1 %v493_v4 }
  0x14   :  { %447 = vmatprep.subr.bf16.mxu0 %v494_v5  ;;  %477 = vmatprep.subr.bf16.mxu1 %v494_v5 }
  0x17   :  { %448 = vmatpush3.bf16.msra.mxu0 %v494_v5  ;;  %485 = vmatpush3.bf16.msra.mxu1 %v494_v5 }
  0x18   :  { %449 = vmatprep.subr.bf16.mxu0 %v495_v6  ;;  %478 = vmatprep.subr.bf16.mxu1 %v495_v6 }
  0x1b   :  { %450 = vmatpush3.bf16.msra.mxu0 %v495_v6  ;;  %486 = vmatpush3.bf16.msra.mxu1 %v495_v6 }
  0x1c   :  { %451 = vmatprep.subr.bf16.mxu0 %v496_v7  ;;  %479 = vmatprep.subr.bf16.mxu1 %v496_v7 }
  0x1f   :  { %452 = vmatpush3.bf16.msra.mxu0 %v496_v7  ;;  %487 = vmatpush3.bf16.msra.mxu1 %v496_v7 }
  0x20   :  { %453 = vmatprep.subr.bf16.mxu0 %v497_v8  ;;  %480 = vmatprep.subr.bf16.mxu1 %v497_v8 }
  0x23   :  { %454 = vmatpush3.bf16.msra.mxu0 %v497_v8  ;;  %488 = vmatpush3.bf16.msra.mxu1 %v497_v8 }
  0x24   :  { %455 = vmatprep.subr.bf16.mxu0 %v498_v9  ;;  %481 = vmatprep.subr.bf16.mxu1 %v498_v9 }
  0x27   :  { %456 = vmatpush3.bf16.msra.mxu0 %v498_v9  ;;  %489 = vmatpush3.bf16.msra.mxu1 %v498_v9 }
  0x28   :  { %457 = vmatprep.subr.bf16.mxu0 %v499_v10  ;;  %482 = vmatprep.subr.bf16.mxu1 %v499_v10 }
  0x2b   :  { %458 = vmatpush3.bf16.msra.mxu0 %v499_v10  ;;  %490 = vmatpush3.bf16.msra.mxu1 %v499_v10 }
  0x2e   :  { %460 = vmatmul.mubr.bf16.vlgmr.msra.gmra.mrb[0].mxu0 %v502_v11  ;;  %468 = vmatmul.mubr.bf16.vlgmr.msra.gmra.mrb[0].mxu1 %v503_v12 }
  0x2f   :  { %463 = vmatprep.mubr.bf16.mxu0 %v504_v13  ;;  %471 = vmatprep.mubr.bf16.mxu1 %v505_v14 }
  0x36   :  { %464 = vmatmul.mubr.bf16.gmra.mrb[4].mxu0 %v506_v15  ;;  %472 = vmatmul.mubr.bf16.gmra.mrb[4].mxu1 %v507_v16 }
 0x101   :  { %v461_v21 = vpop.f32.mrb[0].mxu0  ;;  %v469_v22 = vpop.f32.mrb[0].mxu1 }
 0x102   :  { %v313_v25 = vadd.f32 %v461_v21, %v88_v17  ;;  %v321_v26 = vadd.f32 %v469_v22, %v96_v18  ;;  %v248_v27 = vpop.f32.mrb[1].mxu0  ;;  %v280_v28 = vpop.f32.mrb[1].mxu1 }
 0x103   :  { %v311_v31 = vadd.f32 %v248_v27, %v86_v19  ;;  %v319_v32 = vadd.f32 %v280_v28, %v94_v20  ;;  %v462_v33 = vpop.f32.mrb[2].mxu0  ;;  %v470_v34 = vpop.f32.mrb[2].mxu1 }
 0x104   :  { %329 = vst [vmem:[%s819_s4 + $0x10] sm:$0xff] %v313_v25  ;;  %337 = vst [vmem:[%s819_s4 + $0x50] sm:$0xff] %v321_v26  ;;  %v314_v35 = vadd.f32 %v462_v33, %v89_v23  ;;  %v322_v36 = vadd.f32 %v470_v34, %v97_v24  ;;  %v251_v37 = vpop.f32.mrb[3].mxu0  ;;  %v283_v38 = vpop.f32.mrb[3].mxu1 }
 0x105   :  { %327 = vst [vmem:[%s819_s4] sm:$0xff] %v311_v31  ;;  %335 = vst [vmem:[%s819_s4 + $0x40] sm:$0xff] %v319_v32  ;;  %v312_v39 = vadd.f32 %v251_v37, %v87_v29  ;;  %v320_v40 = vadd.f32 %v283_v38, %v95_v30 }
 0x106   :  { %330 = vst [vmem:[%s819_s4 + $0x18] sm:$0xff] %v314_v35  ;;  %338 = vst [vmem:[%s819_s4 + $0x58] sm:$0xff] %v322_v36 }
 0x107   :  { %328 = vst [vmem:[%s819_s4 + $0x8] sm:$0xff] %v312_v39  ;;  %336 = vst [vmem:[%s819_s4 + $0x48] sm:$0xff] %v320_v40 }
 0x109   :  { %v465_v45 = vpop.f32.mrb[4].mxu0  ;;  %v473_v46 = vpop.f32.mrb[4].mxu1 }
 0x10a   :  { %v317_v49 = vadd.f32 %v465_v45, %v92_v41  ;;  %v325_v50 = vadd.f32 %v473_v46, %v100_v42  ;;  %v264_v51 = vpop.f32.mrb[5].mxu0  ;;  %v296_v52 = vpop.f32.mrb[5].mxu1 }
 0x10b   :  { %v315_v55 = vadd.f32 %v264_v51, %v90_v43  ;;  %v323_v56 = vadd.f32 %v296_v52, %v98_v44  ;;  %v466_v57 = vpop.f32.mrb[6].mxu0  ;;  %v474_v58 = vpop.f32.mrb[6].mxu1 }
 0x10c   :  { %333 = vst [vmem:[%s819_s4 + $0x30] sm:$0xff] %v317_v49  ;;  %341 = vst [vmem:[%s819_s4 + $0x70] sm:$0xff] %v325_v50  ;;  %v318_v59 = vadd.f32 %v466_v57, %v93_v47  ;;  %v326_v60 = vadd.f32 %v474_v58, %v101_v48  ;;  %v267_v61 = vpop.f32.mrb[7].mxu0  ;;  %v299_v62 = vpop.f32.mrb[7].mxu1 }
 0x10d   :  { %331 = vst [vmem:[%s819_s4 + $0x20] sm:$0xff] %v315_v55  ;;  %339 = vst [vmem:[%s819_s4 + $0x60] sm:$0xff] %v323_v56  ;;  %v316_v63 = vadd.f32 %v267_v61, %v91_v53  ;;  %v324_v0 = vadd.f32 %v299_v62, %v99_v54 }
 0x10e   :  { %334 = vst [vmem:[%s819_s4 + $0x38] sm:$0xff] %v318_v59  ;;  %342 = vst [vmem:[%s819_s4 + $0x78] sm:$0xff] %v326_v60 }
 0x10f   :  { %332 = vst [vmem:[%s819_s4 + $0x28] sm:$0xff] %v316_v63  ;;  %340 = vst [vmem:[%s819_s4 + $0x68] sm:$0xff] %v324_v0 }
 0x110 PF:  { %v346_v1 = vld [vmem:[%s819_s4] sm:$0xff]  ;;  %v347_v2 = vld [vmem:[%s819_s4 + $0x8] sm:$0xff]  ;;  %v348_v3 = vld [vmem:[%s819_s4 + $0x10] sm:$0xff] }
 0x111   :  { %v362_v4 = vmax.f32 %v346_v1, 0.0  ;;  %v363_v5 = vmax.f32 %v347_v2, 0.0  ;;  %v364_v6 = vmax.f32 %v348_v3, 0.0  ;;  %v349_v7 = vld [vmem:[%s819_s4 + $0x18] sm:$0xff]  ;;  %v354_v15 = vld [vmem:[%s819_s4 + $0x40] sm:$0xff]  ;;  %v355_v19 = vld [vmem:[%s819_s4 + $0x48] sm:$0xff] }
 0x112   :  { %v365_v10 = vmax.f32 %v349_v7, 0.0  ;;  %v370_v18 = vmax.f32 %v354_v15, 0.0  ;;  %v356_v20 = vld [vmem:[%s819_s4 + $0x50] sm:$0xff]  ;;  %v357_v21 = vld [vmem:[%s819_s4 + $0x58] sm:$0xff]  ;;  %v371_v22 = vmax.f32 %v355_v19, 0.0 }
 0x113   :  { %v352_v13 = vld [vmem:[%s819_s4 + $0x30] sm:$0xff]  ;;  %378 = vst [vmem:[%s819_s4] sm:$0xff] %v362_v4  ;;  %379 = vst [vmem:[%s819_s4 + $0x8] sm:$0xff] %v363_v5  ;;  %v372_v23 = vmax.f32 %v356_v20, 0.0  ;;  %v373_v24 = vmax.f32 %v357_v21, 0.0 }
 0x114   :  { %v350_v8 = vld [vmem:[%s819_s4 + $0x20] sm:$0xff]  ;;  %380 = vst [vmem:[%s819_s4 + $0x10] sm:$0xff] %v364_v6  ;;  %v368_v16 = vmax.f32 %v352_v13, 0.0  ;;  %381 = vst [vmem:[%s819_s4 + $0x18] sm:$0xff] %v365_v10  ;;  %v360_v27 = vld [vmem:[%s819_s4 + $0x70] sm:$0xff] }
 0x115   :  { %v366_v11 = vmax.f32 %v350_v8, 0.0  ;;  %v353_v14 = vld [vmem:[%s819_s4 + $0x38] sm:$0xff]  ;;  %v358_v25 = vld [vmem:[%s819_s4 + $0x60] sm:$0xff]  ;;  %386 = vst [vmem:[%s819_s4 + $0x40] sm:$0xff] %v370_v18  ;;  %v376_v30 = vmax.f32 %v360_v27, 0.0  ;;  %387 = vst [vmem:[%s819_s4 + $0x48] sm:$0xff] %v371_v22 }
 0x116   :  { %v351_v9 = vld [vmem:[%s819_s4 + $0x28] sm:$0xff]  ;;  %v369_v17 = vmax.f32 %v353_v14, 0.0  ;;  %384 = vst [vmem:[%s819_s4 + $0x30] sm:$0xff] %v368_v16  ;;  %v374_v28 = vmax.f32 %v358_v25, 0.0  ;;  %v361_v31 = vld [vmem:[%s819_s4 + $0x78] sm:$0xff]  ;;  %388 = vst [vmem:[%s819_s4 + $0x50] sm:$0xff] %v372_v23 }
 0x117   :  { %v367_v12 = vmax.f32 %v351_v9, 0.0  ;;  %382 = vst [vmem:[%s819_s4 + $0x20] sm:$0xff] %v366_v11  ;;  %v359_v26 = vld [vmem:[%s819_s4 + $0x68] sm:$0xff]  ;;  %389 = vst [vmem:[%s819_s4 + $0x58] sm:$0xff] %v373_v24  ;;  %v377_v32 = vmax.f32 %v361_v31, 0.0 }
 0x118   :  { %385 = vst [vmem:[%s819_s4 + $0x38] sm:$0xff] %v369_v17  ;;  %v375_v29 = vmax.f32 %v359_v26, 0.0  ;;  %390 = vst [vmem:[%s819_s4 + $0x60] sm:$0xff] %v374_v28 }
 0x119   :  { %383 = vst [vmem:[%s819_s4 + $0x28] sm:$0xff] %v367_v12  ;;  %392 = vst [vmem:[%s819_s4 + $0x70] sm:$0xff] %v376_v30 }
 0x11a   :  { %391 = vst [vmem:[%s819_s4 + $0x68] sm:$0xff] %v375_v29  ;;  %393 = vst [vmem:[%s819_s4 + $0x78] sm:$0xff] %v377_v32 }

</bundles_post_ra>
